<compile_context>
chip_gen: v7x
topology: tpu7x:2x2x1
jax: 0.10.0
libtpu: 0.0.40
codegen_flags: <defaults>
</compile_context>

<pallas_src>
import jax
import jax.numpy as jnp
from jax.experimental import pallas as pl
from jax.experimental.pallas import tpu as pltpu


# Parameter-slab layout (rows aligned to multiples of 8 sublanes).
# Each layer occupies rows [row, row+out): weight (out, in) in cols [0, in),
# bias (out, 1) in col [in, in+1).
#   layer 1: rows  0:24, W(24, 8), b col 8
#   layer 2: rows 24:36, W(12,24), b col 24
#   layer 3: rows 40:46, W( 6,12), b col 12
#   layer 4: rows 48:49, W( 1, 6), b col 6
_LAYER_LAYOUT = (
    (0, 24, 8),
    (24, 12, 24),
    (40, 6, 12),
    (48, 1, 6),
)
_PARAM_ROWS = 56   # 49 used rows, padded up to a multiple of 8
_PARAM_COLS = 128  # one lane-width


def mlp_kernel(xt_ref, p_ref, ot_ref):
    # xt_ref: (8, tb) f32, batch on lanes.  p_ref: (56, 128) packed params.
    h = xt_ref[...]

    # Layer 1: (24, 8) @ (8, tb) + (24, 1) -> ReLU
    r0, out_f, in_f = _LAYER_LAYOUT[0]
    w = p_ref[r0:r0 + out_f, 0:in_f]
    b = p_ref[r0:r0 + out_f, in_f:in_f + 1]
    h = jnp.maximum(jnp.dot(w, h, preferred_element_type=jnp.float32) + b, 0.0)

    # Layer 2: (12, 24) @ (24, tb) + (12, 1) -> ReLU
    r0, out_f, in_f = _LAYER_LAYOUT[1]
    w = p_ref[r0:r0 + out_f, 0:in_f]
    b = p_ref[r0:r0 + out_f, in_f:in_f + 1]
    h = jnp.maximum(jnp.dot(w, h, preferred_element_type=jnp.float32) + b, 0.0)

    # Layer 3: (6, 12) @ (12, tb) + (6, 1) -> ReLU
    r0, out_f, in_f = _LAYER_LAYOUT[2]
    w = p_ref[r0:r0 + out_f, 0:in_f]
    b = p_ref[r0:r0 + out_f, in_f:in_f + 1]
    h = jnp.maximum(jnp.dot(w, h, preferred_element_type=jnp.float32) + b, 0.0)

    # Layer 4: (1, 6) @ (6, tb) + (1, 1)  -> lane-dense (1, tb) store
    r0, out_f, in_f = _LAYER_LAYOUT[3]
    w = p_ref[r0:r0 + out_f, 0:in_f]
    b = p_ref[r0:r0 + out_f, in_f:in_f + 1]
    ot_ref[...] = jnp.dot(w, h, preferred_element_type=jnp.float32) + b


def pack_params(params):
    """Pack torch-style (W:(out,in), b:(out,)) params into one (56, 128) f32 slab."""
    (w1, b1, w2, b2, w3, b3, w4, b4) = params
    slab = jnp.zeros((_PARAM_ROWS, _PARAM_COLS), jnp.float32)
    for (r0, out_f, in_f), (w, b) in zip(
            _LAYER_LAYOUT, ((w1, b1), (w2, b2), (w3, b3), (w4, b4))):
        slab = slab.at[r0:r0 + out_f, 0:in_f].set(w.astype(jnp.float32))
        slab = slab.at[r0:r0 + out_f, in_f:in_f + 1].set(
            b.astype(jnp.float32).reshape(out_f, 1))
    return slab


def mlp_forward(x, param_slab, *, tb=128):
    """x: (B, ...) -> (B, 1). Flatten is a wrapper reshape; kernel runs in (feat, batch)."""
    x2 = x.reshape(x.shape[0], -1).astype(jnp.float32)   # nn.Flatten()
    B, F = x2.shape
    assert F == 8, f"expected 8 input features after flatten, got {F}"

    xt = x2.T                                             # (8, B): batch on lanes
    n_blocks = pl.cdiv(B, tb)
    b_pad = n_blocks * tb
    if b_pad != B:
        xt = jnp.pad(xt, ((0, 0), (0, b_pad - B)))

    out_t = pl.pallas_call(
        mlp_kernel,
        out_shape=jax.ShapeDtypeStruct((1, b_pad), jnp.float32),
        grid=(n_blocks,),
        in_specs=[
            pl.BlockSpec((8, tb), lambda i: (0, i)),                    # x^T batch tile
            pl.BlockSpec((_PARAM_ROWS, _PARAM_COLS), lambda i: (0, 0)),  # whole param slab
        ],
        out_specs=pl.BlockSpec((1, tb), lambda i: (0, i)),
        compiler_params=pltpu.CompilerParams(
            dimension_semantics=("parallel",)),  # shard batch tiles across v7x cores
    )(xt, param_slab)

    return out_t[:, :B].T                                  # back to (B, 1)


def init_params(key):
    """Deterministic init mirroring nn.Linear's U(-1/sqrt(fan_in), 1/sqrt(fan_in)).

    Stored torch-style: W is (out_features, in_features), b is (out_features,).
    """
    dims = [(8, 24), (24, 12), (12, 6), (6, 1)]
    params = []
    for i, (fan_in, fan_out) in enumerate(dims):
        kw, kb = jax.random.split(jax.random.fold_in(key, i))
        bound = 1.0 / jnp.sqrt(jnp.float32(fan_in))
        w = jax.random.uniform(kw, (fan_out, fan_in), jnp.float32, -bound, bound)
        b = jax.random.uniform(kb, (fan_out,), jnp.float32, -bound, bound)
        params.extend([w, b])
    return tuple(params)


def reference_forward(x, params):
    (w1, b1, w2, b2, w3, b3, w4, b4) = params
    h = x.reshape(x.shape[0], -1).astype(jnp.float32)
    h = jnp.maximum(h @ w1.T + b1, 0.0)
    h = jnp.maximum(h @ w2.T + b2, 0.0)
    h = jnp.maximum(h @ w3.T + b3, 0.0)
    return h @ w4.T + b4


if __name__ == "__main__":
    key = jax.random.PRNGKey(0)
    k_x, k_p = jax.random.split(key)

    # Input is (batch, 8); nn.Flatten() on an already-2D tensor is identity.
    # batch=256 -> two 128-wide batch tiles so the grid/pipelining path is exercised.
    batch = 256
    x = jax.random.normal(k_x, (batch, 8), dtype=jnp.float32)

    params = init_params(k_p)
    slab = pack_params(params)

    out = jax.block_until_ready(mlp_forward(x, slab))

    ref = reference_forward(x, params)
    assert out.shape == (batch, 1)
    assert jnp.allclose(out, ref, atol=1e-5, rtol=1e-5)

    print("KERNEL_OK")
</pallas_src>

<mosaic_0001>
module attributes {stable_mosaic.version = 11 : i64} {
  func.func @mlp_kernel(%arg0: i32, %arg1: memref<8x128xf32, #tpu.memory_space<vmem>>, %arg2: memref<56x128xf32, #tpu.memory_space<vmem>>, %arg3: memref<1x128xf32, #tpu.memory_space<vmem>>) attributes {dimension_semantics = [#tpu.dimension_semantics<parallel>], iteration_bounds = array<i64: 2>, scalar_prefetch = 0 : i64, scratch_operands = 0 : i64, tpu.core_type = #tpu.core_type<tc>, window_params = [{transform_indices = @transform_0, window_bounds = array<i64: 8, 128>}, {pipeline_mode = #tpu.pipeline_mode<synchronous>, transform_indices = @transform_1, window_bounds = array<i64: 56, 128>}, {transform_indices = @transform_2, window_bounds = array<i64: 1, 128>}]} {
    %c0 = arith.constant 0 : index
    %c0_0 = arith.constant 0 : index
    %0 = vector.load %arg1[%c0, %c0_0] : memref<8x128xf32, #tpu.memory_space<vmem>>, vector<8x128xf32>
    %c0_1 = arith.constant 0 : index
    %c0_2 = arith.constant 0 : index
    %1 = vector.load %arg2[%c0_1, %c0_2] : memref<56x128xf32, #tpu.memory_space<vmem>>, vector<24x8xf32>
    %c0_3 = arith.constant 0 : index
    %c8 = arith.constant 8 : index
    %2 = vector.load %arg2[%c0_3, %c8] : memref<56x128xf32, #tpu.memory_space<vmem>>, vector<24x1xf32>
    %cst = arith.constant dense<0.000000e+00> : vector<24x128xf32>
    %3 = tpu.matmul %1, %0, %cst {dimension_numbers = #tpu.dot_dimension_numbers<[1], [0], [0], [1], [0, 0, 1, 1], [], []>} : vector<24x8xf32>, vector<8x128xf32>, vector<24x128xf32> -> vector<24x128xf32>
    %4 = vector.broadcast %2 : vector<24x1xf32> to vector<24x128xf32>
    %5 = arith.addf %3, %4 : vector<24x128xf32>
    %cst_4 = arith.constant 0.000000e+00 : f32
    %6 = vector.broadcast %cst_4 : f32 to vector<24x128xf32>
    %7 = arith.maximumf %5, %6 : vector<24x128xf32>
    %c24 = arith.constant 24 : index
    %c0_5 = arith.constant 0 : index
    %8 = vector.load %arg2[%c24, %c0_5] : memref<56x128xf32, #tpu.memory_space<vmem>>, vector<12x24xf32>
    %c24_6 = arith.constant 24 : index
    %c24_7 = arith.constant 24 : index
    %9 = vector.load %arg2[%c24_6, %c24_7] : memref<56x128xf32, #tpu.memory_space<vmem>>, vector<12x1xf32>
    %cst_8 = arith.constant dense<0.000000e+00> : vector<12x128xf32>
    %10 = tpu.matmul %8, %7, %cst_8 {dimension_numbers = #tpu.dot_dimension_numbers<[1], [0], [0], [1], [0, 0, 1, 1], [], []>} : vector<12x24xf32>, vector<24x128xf32>, vector<12x128xf32> -> vector<12x128xf32>
    %11 = vector.broadcast %9 : vector<12x1xf32> to vector<12x128xf32>
    %12 = arith.addf %10, %11 : vector<12x128xf32>
    %cst_9 = arith.constant 0.000000e+00 : f32
    %13 = vector.broadcast %cst_9 : f32 to vector<12x128xf32>
    %14 = arith.maximumf %12, %13 : vector<12x128xf32>
    %c40 = arith.constant 40 : index
    %c0_10 = arith.constant 0 : index
    %15 = vector.load %arg2[%c40, %c0_10] : memref<56x128xf32, #tpu.memory_space<vmem>>, vector<6x12xf32>
    %c40_11 = arith.constant 40 : index
    %c12 = arith.constant 12 : index
    %16 = vector.load %arg2[%c40_11, %c12] : memref<56x128xf32, #tpu.memory_space<vmem>>, vector<6x1xf32>
    %cst_12 = arith.constant dense<0.000000e+00> : vector<6x128xf32>
    %17 = tpu.matmul %15, %14, %cst_12 {dimension_numbers = #tpu.dot_dimension_numbers<[1], [0], [0], [1], [0, 0, 1, 1], [], []>} : vector<6x12xf32>, vector<12x128xf32>, vector<6x128xf32> -> vector<6x128xf32>
    %18 = vector.broadcast %16 : vector<6x1xf32> to vector<6x128xf32>
    %19 = arith.addf %17, %18 : vector<6x128xf32>
    %cst_13 = arith.constant 0.000000e+00 : f32
    %20 = vector.broadcast %cst_13 : f32 to vector<6x128xf32>
    %21 = arith.maximumf %19, %20 : vector<6x128xf32>
    %c48 = arith.constant 48 : index
    %c0_14 = arith.constant 0 : index
    %22 = vector.load %arg2[%c48, %c0_14] : memref<56x128xf32, #tpu.memory_space<vmem>>, vector<1x6xf32>
    %c48_15 = arith.constant 48 : index
    %c6 = arith.constant 6 : index
    %23 = vector.load %arg2[%c48_15, %c6] : memref<56x128xf32, #tpu.memory_space<vmem>>, vector<1x1xf32>
    %cst_16 = arith.constant dense<0.000000e+00> : vector<1x128xf32>
    %24 = tpu.matmul %22, %21, %cst_16 {dimension_numbers = #tpu.dot_dimension_numbers<[1], [0], [0], [1], [0, 0, 1, 1], [], []>} : vector<1x6xf32>, vector<6x128xf32>, vector<1x128xf32> -> vector<1x128xf32>
    %25 = vector.broadcast %23 : vector<1x1xf32> to vector<1x128xf32>
    %26 = arith.addf %24, %25 : vector<1x128xf32>
    %c0_17 = arith.constant 0 : index
    %c0_18 = arith.constant 0 : index
    %27 = vector.load %arg3[%c0_17, %c0_18] : memref<1x128xf32, #tpu.memory_space<vmem>>, vector<1x128xf32>
    tpu.vector_store %arg3[%c0_17, %c0_18], %26 {strides = array<i32>} : memref<1x128xf32, #tpu.memory_space<vmem>>, vector<1x128xf32>,
    return
  }
  func.func @transform_0(%arg0: i32) -> (i32, i32) {
    %c0_i32 = arith.constant 0 : i32
    %c0_i32_0 = arith.constant 0 : i32
    return %c0_i32, %arg0 : i32, i32
  }
  func.func @transform_1(%arg0: i32) -> (i32, i32) {
    %c0_i32 = arith.constant 0 : i32
    %c0_i32_0 = arith.constant 0 : i32
    %c0_i32_1 = arith.constant 0 : i32
    return %c0_i32, %c0_i32_0 : i32, i32
  }
  func.func @transform_2(%arg0: i32) -> (i32, i32) {
    %c0_i32 = arith.constant 0 : i32
    %c0_i32_0 = arith.constant 0 : i32
    return %c0_i32, %arg0 : i32, i32
  }
}

</mosaic_0001>

<bundles_post_ra>
// kernel: tpu_custom_call.1
= control target key start
LH: loop header
LB: loop body
LE: loop exit
PB: predicated region body
PF: predicated region fallthrough
CT: control target
= control target key end

     0   :  { %7 = vsyncpa [#allocation3], 0  ;;  %s1144_s0 = inlined_call_operand.hbm [shape: f32[8,256], index: 0, kind: input, shape index: {}]   ;;  %s1145_s1 = inlined_call_operand.hbm [shape: f32[56,128], index: 1, kind: input, shape index: {}]   ;;  %s1146_s2 = inlined_call_operand.hbm [shape: f32[1,256], index: 2, kind: output, shape index: {}]  }
   0x1   :  { %9 = vsyncpa [#allocation3 + $0x1], 0 }
   0x2   :  { %10 = vsyncpa [#allocation6], 0 }
   0x3   :  { %11 = vsyncpa [#allocation4], 0 }
   0x4   :  { %13 = vsyncpa [#allocation4 + $0x1], 0  ;;  %s940_s9 = smov 0   ;;  %s942_s10 = smov 0  }
   0x5   :  { %s944_s11 = smov 0   ;;  %s946_s12 = smov 0  }
   0x6 LB: > { %s961_s13 = sadd.s32 4294967295, %s910_s12   ;;  %s633_s14 = sadd.s32 4294967294, %s910_s12   ;;  %s910_s12 = sphi %s946_s12, %s1166_s12   ;;  %s906_s11 = sphi %s944_s11, %s1165_s11   ;;  %s902_s10 = sphi %s942_s10, %s1164_s10   ;;  %s898_s9 = sphi %s940_s9, %s1163_s9  }
   0x7   : > { %p39_p0 = scmp.ne.s32.totalorder %s902_s10, %s898_s9  ;;  %p1147_p1 = scmp.eq.s32.totalorder %s961_s13, 0 }
   0x8   : > { %p90_p3 = scmp.eq.s32.totalorder %s633_s14, 1  ;;  %p634_p5 = scmp.ge.s32.totalorder %s910_s12, 1 }
   0x9   : > { %p970_p4 = por %p1147_p1, %p39_p0  ;;  %p97_p7 = scmp.lt.s32.totalorder %s910_s12, 3 }
   0xa   : > { %p975_p6 = por %p90_p3, %p39_p0  ;;  %s912_s18 = smov [#allocation5]  }
   0xb   : > { %s1150_s15 = scalar_select %p970_p4, 1, 0 }
   0xc   : > { %s1151_s16 = scalar_select %p975_p6, 1, 0 }
   0xd   : > { %p980_p8 = pnand %p634_p5, %p97_p7  ;;  %s109_s19 = sshll.u32 %s912_s18, 4  ;;  %s984_s19 = int_to_ptr.vmem [resolvable:$true] %s109_s19 }
   0xe   : > { %s996_s21 = sadd.s32 1, %s910_s12   ;;  %s26_s22 = sadd.s32 1, %s906_s11 }
   0xf   : > { %s1152_s17 = scalar_select %p980_p8, 1, 0 }
  0x10   : > { %p716_p9 = pneg %p980_p8  ;;  %s23_s23 = ssub.s32 %s910_s12, %s996_s21 }
  0x11   : > { %s782_s26 = scalar_lea.hbm %s1145_s1, 896 }
  0x12   : > { %p991_p11 = pnand %p716_p9, %p1147_p1  ;;  %p783_p12 = scmp.ne.s32.totalorder %s1145_s1, %s782_s26 }
  0x13   : > { %p789_p5 = scmp.lt.u32.totalorder %s782_s26, %s1145_s1 }
  0x14   : > { %p784_p13 = pneg %p991_p11 }
  0x16   : > { %p785_p0 = pnand %p784_p13, %p783_p12 }
  0x18   : > { %p786_p3 = pneg %p785_p0 }
  0x1a   : > { %p791_p7 = pnand %p789_p5, %p786_p3 }
  0x1c   : > { %794 = shalt.err (!%p791_p7)
}
  0x1d   : > { %s795_s3 = scalar_lea.vmem %s984_s19, 896  ;;  %p803_p2 = scmp.lt.s32.totalorder %s984_s19, %s984_s19 }
  0x1e   : > { %p796_p9 = scmp.ne.s32.totalorder %s984_s19, %s795_s3  ;;  %p804_p6 = scmp.lt.s32.totalorder %s795_s3, %s795_s3 }
  0x20   : > { %p798_p10 = pnand %p796_p9, %p784_p13  ;;  %p805_p4 = por %p804_p6, %p803_p2 }
  0x22   : > { %p799_p1 = pneg %p798_p10 }
  0x24   : > { %p806_p8 = pnand %p805_p4, %p799_p1 }
  0x26   : > { %809 = shalt.err (!%p806_p8)
}
  0x27   : > { %s913_s4 = smov 128   ;;  %s914_s5 = smov 8  }
  0x28   : > { %719 = dma.hbm_to_vmem [thread:$0]  (!%p991_p11), %s1145_s1, 896, %s984_s19, [#allocation6], %s913_s4, %s913_s4, %s914_s5  }
  0x29   : > { %p24_p2 = scmp.eq.s32.totalorder %s23_s23, 0  ;;  %p33_p1 = scmp.ne.s32.totalorder %s906_s11, %s902_s10 }
  0x2a   : > { %p34_p4 = scmp.eq.s32.totalorder %s910_s12, 0  ;;  %p729_p6 = scmp.lt.s32.totalorder %s910_s12, 2 }
  0x2b   : > { %s1027_s8 = scalar_select %p24_p2, %s906_s11, %s26_s22  }
  0x2c   : > { %p35_p8 = por %p34_p4, %p33_p1  ;;  %p1154_p10 = scmp.eq.s32.totalorder %s961_s13, 1 }
  0x2d   : > { %s123_s18 = sand.u32 1, %s906_s11   ;;  %s638_s24 = sshll.u32 %s910_s12, 7 }
  0x2e   : > { %p1031_p12 = por %p1154_p10, %p33_p1  ;;  %s637_s25 = sshll.u32 %s123_s18, 3 }
  0x2f   : > { %s1040_s27 = scalar_lea.hbm %s1144_s0, %s638_s24  ;;  %s127_s19 = scalar_lea.vmem [#allocation2], %s637_s25 }
  0x30   : > { %s134_s22 = sshll.u32 %s127_s19, 4  ;;  %p1042_p11 = pnand %p729_p6, %p35_p8  ;;  %s1046_s22 = int_to_ptr.vmem [resolvable:$true] %s134_s22 }
  0x31   : > { %s124_s28 = scalar_lea.sflag [#allocation3], %s123_s18  ;;  %s810_s29 = scalar_lea.hbm %s1040_s27, 128 }
  0x32   : > { %p811_p13 = scmp.ne.s32.totalorder %s1040_s27, %s810_s29  ;;  %p812_p0 = pneg %p1042_p11 }
  0x33   : > { %s815_s4 = scalar_lea.hbm %s1144_s0, 256  ;;  %p816_p7 = scmp.lt.u32.totalorder %s1040_s27, %s1144_s0 }
  0x34   : > { %p813_p3 = pnand %p812_p0, %p811_p13  ;;  %p817_p9 = scmp.lt.u32.totalorder %s815_s4, %s810_s29 }
  0x35   : > { %p819_p1 = scmp.lt.u32.totalorder %s810_s29, %s1040_s27 }
  0x36   : > { %p814_p5 = pneg %p813_p3  ;;  %p818_p2 = por %p817_p9, %p816_p7 }
  0x38   : > { %p820_p4 = por %p819_p1, %p818_p2 }
  0x3a   : > { %p821_p6 = pnand %p820_p4, %p814_p5 }
  0x3c   : > { %824 = shalt.err (!%p821_p6)
}
  0x3d   : > { %s825_s7 = scalar_lea.vmem %s1046_s22, 128  ;;  %s915_s18 = smov [#allocation2]  }
  0x3e   : > { %p826_p8 = scmp.ne.s32.totalorder %s1046_s22, %s825_s7  ;;  %s830_s24 = sshll.u32 %s915_s18, 4  ;;  %s831_s24 = int_to_ptr.vmem [resolvable:$false] %s830_s24 }
  0x3f   : > { %s832_s25 = scalar_lea.vmem %s831_s24, 256  ;;  %p833_p3 = scmp.lt.s32.totalorder %s1046_s22, %s831_s24 }
  0x40   : > { %p828_p10 = pnand %p826_p8, %p812_p0  ;;  %p834_p7 = scmp.lt.s32.totalorder %s832_s25, %s825_s7 }
  0x42   : > { %p829_p13 = pneg %p828_p10  ;;  %p835_p9 = por %p834_p7, %p833_p3 }
  0x44   : > { %p836_p2 = pnand %p835_p9, %p829_p13 }
  0x46   : > { %839 = shalt.err (!%p836_p2)
}
  0x47   : > { %723 = dma.hbm_to_vmem [thread:$0]  (!%p1042_p11), %s1040_s27, 128, %s1046_s22, %s124_s28  }
  0x48   : > { %p1157_p5 = scmp.ne.s32.totalorder %s1152_s17, 0 }
  0x49   : > { %s1076_s20 = sand.u32 (!%p1157_p5), 1, %s902_s10   ;;  %p1158_p0 = scmp.ne.s32.totalorder (!%p1157_p5), %s1150_s15, 0 }
  0x4a   : > { %143 = sbr.rel (%p1157_p5) target bundleno = 984 (0x3d8), region = 28  ;;  %s640_s26 = sshll.u32 (!%p1157_p5), %s1076_s20, 3 }
  0x4b   : > { %s146_s19 = scalar_lea.sflag (!%p1157_p5), [#allocation3], %s1076_s20  ;;  %s149_s29 = scalar_lea.vmem (!%p1157_p5), [#allocation2], %s640_s26 }
  0x51   : > { %885 = dma.done.wait (%p1158_p0), %s146_s19, 128  }
  0x52   : > { %887 = vsyncadd (%p1158_p0), %s146_s19, 4294967168  ;;  %p1159_p1 = scmp.eq.s32.totalorder %s961_s13, 0 }
  0x54   : > { %889 = dma.done.wait (%p1159_p1), [#allocation6], 896   ;;  %p1160_p11 = pmov %p1159_p1 }
  0x55   : > { %v916_v0 = vmov 0.0   ;;  %vm917_vm0 = vmmov 0   ;;  %v918_v1 = vmov 8   ;;  %vm192_vm1 = vcmask 64512   ;;  %v173_v2 = vld [vmem:[%s149_s29] sm:$0xff]  ;;  %v174_v3 = vld [vmem:[#allocation5] sm:$0xff] }
  0x56   : > { %891 = vsyncadd (%p1160_p11), [#allocation6], 4294966400  ;;  %668 = vmatprep.subr.mxu0 %v916_v0  ;;  %670 = vmatprep.mubr.msk.f32.mxu0 %vm917_vm0, %v916_v0  ;;  %v176_v4 = vld [vmem:[#allocation5 + $0x10] sm:$0xff]  ;;  %v175_v5 = vld [vmem:[#allocation5 + $0x8] sm:$0xff]  ;;  %vm294_vm2 = vcmask 195584   ;;  %v919_v8 = vmov 24  }
  0x57   : > { %775 = vset.pattern.permute.xlu0 %v918_v1  ;;  %776 = vset.pattern.permute.xlu1 %v918_v1  ;;  %v282_v6 = vld [vmem:[#allocation5 + $0x18] sm:$0xff]  ;;  %v283_v7 = vld [vmem:[#allocation5 + $0x20] sm:$0xf]  ;;  %v920_v25 = vmov 0.0|0.0   ;;  %v376_v26 = vld [vmem:[#allocation5 + $0x28] sm:$0x3f] }
  0x58   : > { %669 = vmatpush3.msra.mxu0 %v173_v2  ;;  %179 = vperm.xlu0 %775, %v174_v3   ;;  %v921_v27 = vmov 12   ;;  %vm385_vm3 = vcmask 1043456   ;;  %vm922_vm4 = vmmov 1   ;;  %vm382_vm6 = vcmask 97280   ;;  %v460_v37 = vld [vmem:[#allocation5 + $0x30] sm:$0x1] }
  0x59   : > { %671 = vmatmul.mubr.msk.f32.vlgmr.msra.gmra.mrb[0].mxu0 %vm192_vm1, %v174_v3  ;;  %189 = vperm.xlu1 %776, %v176_v4   ;;  %vm706_vm5 = vmpackc.low %vm385_vm3, %vm922_vm4  ;;  %v923_v38 = vmov 6   ;;  %vm469_vm7 = vcmask 1045504   ;;  %vm466_vm8 = vcmask 48128   ;;  %s651_s15 = sshll.u32 %s961_s13, 4  ;;  %s172_s17 = scalar_lea.vmem [#allocation7], %s1076_s20 }
  0x5a   : > { %673 = vmatprep.mubr.msk.f32.mxu0 %vm917_vm0, %v916_v0  ;;  %695 = vmatprep.subr.mxu0 %v916_v0  ;;  %s557_s27 = sshll.u32 %s172_s17, 4  ;;  %s1100_s28 = scalar_lea.hbm %s1146_s2, %s651_s15  ;;  %s1102_s27 = int_to_ptr.vmem [resolvable:$true] %s557_s27 }
  0x5b   : > { %685 = vmatprep.mubr.msk.f32.mxu1 %vm294_vm2, %v282_v6  ;;  %s545_s30 = scalar_lea.sflag [#allocation4], %s1076_s20  ;;  %s840_s3 = scalar_lea.vmem %s1102_s27, 16 }
  0x5c   : > { %184 = vperm.xlu0 %775, %v175_v5   ;;  %p841_p4 = scmp.ne.s32.totalorder %s1102_s27, %s840_s3  ;;  %s924_s13 = smov [#allocation7]  }
  0x5d   : > { %674 = vmatmul.mubr.msk.f32.gmra.mrb[2].mxu0 %vm192_vm1, %v175_v5  ;;  %777 = vset.pattern.permute.xlu1 %v919_v8  ;;  %s844_s4 = sshll.u32 %s924_s13, 4  ;;  %s845_s4 = int_to_ptr.vmem [resolvable:$false] %s844_s4 }
  0x5e   : > { %676 = vmatprep.mubr.msk.f32.mxu0 %vm917_vm0, %v916_v0  ;;  %286 = vperm.xlu1 %777, %v282_v6   ;;  %p842_p6 = pnand %p841_p4, %p1031_p12  ;;  %s846_s5 = scalar_lea.vmem %s845_s4, 32 }
  0x5f   : > { %p847_p10 = scmp.lt.s32.totalorder %s1102_s27, %s845_s4  ;;  %p848_p13 = scmp.lt.s32.totalorder %s846_s5, %s840_s3 }
  0x60   : > { %778 = vset.pattern.permute.xlu0 %v919_v8  ;;  %p843_p8 = pneg %p842_p6 }
  0x61   : > { %677 = vmatmul.mubr.msk.f32.gmra.mrb[4].mxu0 %vm192_vm1, %v176_v4  ;;  %291 = vperm.xlu0 %778, %v283_v7   ;;  %p849_p3 = por %p848_p13, %p847_p10 }
  0x62   : > { %697 = vmatprep.mubr.msk.f32.mxu0 %vm917_vm0, %v916_v0  ;;  %779 = vset.pattern.permute.xlu1 %v921_v27 }
  0x63   : > { %379 = vperm.xlu1 %779, %v376_v26   ;;  %p850_p7 = pnand %p849_p3, %p843_p8 }
  0x65   : > { %781 = vset.pattern.permute.xlu0 %v923_v38 }
  0x67   : > { %780 = vset.pattern.permute.xlu1 %v923_v38 }
  0x68   : > { %463 = vperm.xlu1 %780, %v460_v37  }
  0xd7   : > { %v180_v9 = vpop.permute.xlu0 %179 }
  0xd8   : > { %v190_v17 = vpop.permute.xlu1 %189 }
  0xdb   : > { %v185_v13 = vpop.permute.xlu0 %184 }
  0xdd   : > { %v287_v29 = vpop.permute.xlu1 %286 }
  0xe0   : > { %v292_v28 = vpop.permute.xlu0 %291 }
  0xe2   : > { %v380_v39 = vpop.permute.xlu1 %379 }
  0xe7   : > { %v464_v44 = vpop.permute.xlu1 %463 }
 0x12c   : > { %v265_v10 = vpop.f32.mrb[0].mxu0 }
 0x12d   : > { %v672_v11 = vpop.f32.mrb[1].mxu0  ;;  %v266_v12 = vadd.f32 %v265_v10, %v180_v9 }
 0x12f   : > { %v279_v18 = vmax.f32 %v266_v12, 0.0 }
 0x130   : > { %v270_v14 = vpop.f32.mrb[2].mxu0 }
 0x131   : > { %v271_v15 = vadd.f32 %v270_v14, %v185_v13  ;;  %v675_v16 = vpop.f32.mrb[3].mxu0 }
 0x133   : > { %v280_v19 = vmax.f32 %v271_v15, 0.0 }
 0x134   : > { %v275_v20 = vpop.f32.mrb[4].mxu0 }
 0x135   : > { %v276_v21 = vadd.f32 %v275_v20, %v190_v17  ;;  %v678_v22 = vpop.f32.mrb[5].mxu0  ;;  %v700_v23 = vpack.c.bf16 %v280_v19, %v279_v18 }
 0x137   : > { %v281_v24 = vmax.f32 %v276_v21, 0.0  ;;  %701 = vmatprep.subr.bf16.mxu1 %v700_v23 }
 0x138   : > { %703 = vmatpush3.bf16.msra.mxu1 %v700_v23 }
 0x139   : > { %683 = vmatprep.subr.mxu1 %v281_v24 }
 0x13c   : > { %684 = vmatpush3.msra.mxu1 %v281_v24 }
 0x13d   : > { %686 = vmatmul.mubr.msk.f32.vlgmr.msra.gmra.mrb[0].mxu1 %vm294_vm2, %v283_v7  ;;  %704 = vmatprep.subr.bf16.mxu1 %v920_v25 }
 0x13e   : > { %692 = vmatprep.mubr.msk.f32.mxu1 %vm917_vm0, %v916_v0 }
 0x210   : > { %v687_v30 = vpop.f32.mrb[0].mxu1 }
 0x211   : > { %v371_v31 = vadd.f32 %v687_v30, %v292_v28  ;;  %v365_v32 = vpop.f32.mrb[1].mxu1 }
 0x212   : > { %v366_v33 = vadd.f32 %v365_v32, %v287_v29 }
 0x213   : > { %v375_v34 = vmax.f32 %v371_v31, 0.0 }
 0x214   : > { %v374_v35 = vmax.f32 %v366_v33, 0.0 }
 0x216   : > { %v705_v36 = vpack.c.bf16 %v375_v34, %v374_v35 }
 0x218   : > { %707 = vmatpush3.bf16.msk.msra.mxu1 %vm706_vm5, %v705_v36 }
 0x21b   : > { %693 = vmatmul.mubr.msk.f32.vlgmr.msra.gmra.mrb[2].mxu1 %vm382_vm6, %v376_v26 }
 0x2ee   : > { %v455_v40 = vpop.f32.mrb[2].mxu1 }
 0x2ef   : > { %v456_v41 = vadd.f32 %v455_v40, %v380_v39  ;;  %v694_v42 = vpop.f32.mrb[3].mxu1 }
 0x2f1   : > { %v459_v43 = vmax.f32 %v456_v41, 0.0 }
 0x2f3   : > { %696 = vmatpush3.msk.msra.mxu0 %vm469_vm7, %v459_v43 }
 0x2f4   : > { %698 = vmatmul.mubr.msk.f32.vlgmr.msra.gmra.mrb[6].mxu0 %vm466_vm8, %v460_v37 }
 0x3c7   : > { %v539_v45 = vpop.f32.mrb[6].mxu0 }
 0x3c8   : > { %v540_v46 = vadd.f32 %v539_v45, %v464_v44  ;;  %v699_v47 = vpop.f32.mrb[7].mxu0 }
 0x3ca   : > { %543 = vst [vmem:[%s172_s17] sm:$0x1] %v540_v46 }
 0x3cb   : > { %853 = shalt.err (!%p850_p7)
}
 0x3cc   : > { %s854_s6 = scalar_lea.hbm %s1100_s28, 16  ;;  %s858_s24 = scalar_lea.hbm %s1146_s2, 32 }
 0x3cd   : > { %p855_p9 = scmp.ne.s32.totalorder %s1100_s28, %s854_s6  ;;  %p859_p0 = scmp.lt.u32.totalorder %s1100_s28, %s1146_s2 }
 0x3ce   : > { %p860_p1 = scmp.lt.u32.totalorder %s858_s24, %s854_s6  ;;  %p862_p4 = scmp.lt.u32.totalorder %s854_s6, %s1100_s28 }
 0x3cf   : > { %p856_p2 = pnand %p855_p9, %p1031_p12 }
 0x3d0   : > { %p861_p11 = por %p860_p1, %p859_p0 }
 0x3d1   : > { %p857_p5 = pneg %p856_p2 }
 0x3d2   : > { %p863_p6 = por %p862_p4, %p861_p11 }
 0x3d4   : > { %p864_p8 = pnand %p863_p6, %p857_p5 }
 0x3d6   : > { %867 = shalt.err (!%p864_p8)
}
 0x3d7   : > { %714 = dma.vmem_to_hbm [thread:$0]  (%p1031_p12), %s1102_s27, 16, %s1100_s28, %s545_s30  }
 0x3d8 PF: > { %s569_s26 = sand.u32 1, %s898_s9   ;;  %p1161_p10 = scmp.ne.s32.totalorder %s1151_s16, 0 }
 0x3d9   : > { %p1162_p13 = scmp.ge.s32.totalorder %s910_s12, 2  ;;  %s570_s19 = scalar_lea.sflag [#allocation4], %s569_s26 }
 0x3db   : > { %p725_p3 = pnand %p1162_p13, %p1161_p10 }
 0x3dd   : > { %893 = dma.done.wait (!%p725_p3), %s570_s19, 16  }
 0x3de   : > { %895 = vsyncadd (!%p725_p3), %s570_s19, 4294967280  ;;  %p16_p7 = scmp.ge.s32.totalorder %s996_s21, 4   ;;  %s1163_s9 = smov %s902_s10 }
 0x3df   : > { %s1164_s10 = smov %s906_s11  ;;  %s1165_s11 = smov %s1027_s8 }
 0x3e0   : > { %s1166_s12 = smov %s996_s21  ;;  %18 = sbr.rel (!%p16_p7) target bundleno = 6 (0x6), region = 77 }
 0x3e7   :  { %574 = vsyncpa [#allocation3], 1 }
 0x3e8   :  { %576 = vsyncpa [#allocation3 + $0x1], 1 }
 0x3e9   :  { %577 = vsyncpa [#allocation6], 1 }
 0x3ea   :  { %578 = vsyncpa [#allocation4], 1 }
 0x3eb   :  { %580 = vsyncpa [#allocation4 + $0x1], 1 }

</bundles_post_ra>
